<compile_context>
chip_gen: v7x
topology: tpu7x:2x2x1
jax: 0.10.0
libtpu: 0.0.40
codegen_flags: <defaults>
</compile_context>

<pallas_src>
import jax
import jax.numpy as jnp
from jax.experimental import pallas as pl
from jax.experimental.pallas import tpu as pltpu


def _clip_embedding_kernel(tok_ref, emb_hbm, pos_ref, out_ref, gathered, copy_sem):
    """Row-gather token embeddings via DMA, fuse the positional add.

    tok_ref  : (B*T,) int32 SMEM (scalar prefetch)  -- flattened token ids
    emb_hbm  : (V, D) HBM ref (memory_space=pl.ANY) -- full embedding table
    pos_ref  : (T, D) VMEM                          -- position embedding (resident)
    out_ref  : (bt, T, D) VMEM                      -- output tile (bt batch elements)
    gathered : (bt*T, D) VMEM scratch               -- gathered embedding rows
    copy_sem : DMA semaphore
    """
    bt, T, D = out_ref.shape
    n_rows = bt * T
    row_start = pl.program_id(0) * n_rows

    # Issue all row-gather DMAs up front so they overlap with each other.
    # Token ids come straight from SMEM (zero vector-slot cost).
    @pl.loop(0, n_rows)
    def _issue(r):
        tok_id = tok_ref[row_start + r]
        pltpu.make_async_copy(
            emb_hbm.at[pl.ds(tok_id, 1), :],
            gathered.at[pl.ds(r, 1), :],
            copy_sem,
        ).start()

    # Drain: one wait per issued copy (all descriptors have identical (1, D) size,
    # so waiting in-order on the shared semaphore is correct regardless of DMA
    # completion order).
    @pl.loop(0, n_rows)
    def _drain(r):
        pltpu.make_async_copy(
            emb_hbm.at[pl.ds(0, 1), :],      # dummy src slice: only shape/sem matter
            gathered.at[pl.ds(r, 1), :],
            copy_sem,
        ).wait()

    # Fused positional add (VPU add is free under the DMA-bound roofline).
    rows = gathered[...].reshape(bt, T, D)
    out_ref[...] = (rows + pos_ref[...][None, :, :]).astype(out_ref.dtype)


def _pick_batch_tile(B, T, target_rows=512):
    """Batch elements per grid step: aim for ~target_rows rows per output tile,
    but keep >= 2 grid steps when B > 1 so both v7x TensorCores get work."""
    bt = max(1, min(B, max(1, target_rows // max(T, 1))))
    while B % bt != 0:
        bt -= 1
    if B > 1 and B // bt < 2:
        for cand in range(bt - 1, 0, -1):
            if B % cand == 0 and B // cand >= 2:
                bt = cand
                break
    return bt


def clip_embedding(tokens, token_embedding, position_embedding, *, target_rows=512):
    """tokens: (B, T) int; token_embedding: (V, D); position_embedding: (T, D)."""
    B, T = tokens.shape
    V, D = token_embedding.shape
    assert position_embedding.shape == (T, D)

    # Token ids are addressing data -> flatten and scalar-prefetch into SMEM.
    # int64 -> int32 is safe for any realistic vocab size (CLIP V ~ 49408).
    tokens_flat = tokens.reshape(B * T).astype(jnp.int32)

    bt = _pick_batch_tile(B, T, target_rows)
    n_rows = bt * T
    grid = (B // bt,)
    out_dtype = jnp.result_type(token_embedding.dtype, position_embedding.dtype)

    return pl.pallas_call(
        _clip_embedding_kernel,
        out_shape=jax.ShapeDtypeStruct((B, T, D), out_dtype),
        grid_spec=pltpu.PrefetchScalarGridSpec(
            num_scalar_prefetch=1,   # tokens -> SMEM; also passed to every index_map
            grid=grid,
            in_specs=[
                # Full embedding table stays in HBM; rows are DMA-gathered on demand.
                pl.BlockSpec(memory_space=pl.ANY),
                # Position table: constant block index -> stays VMEM resident.
                pl.BlockSpec((T, D), lambda b, tok: (0, 0)),
            ],
            out_specs=pl.BlockSpec((bt, T, D), lambda b, tok: (b, 0, 0)),
            scratch_shapes=[
                pltpu.VMEM((n_rows, D), token_embedding.dtype),
                pltpu.SemaphoreType.DMA,
            ],
        ),
        compiler_params=pltpu.CompilerParams(
            dimension_semantics=("parallel",)),
    )(tokens_flat, token_embedding, position_embedding)


if __name__ == "__main__":
    # Small shapes consistent with the module: n_vocab=64, n_embd=32, n_token=8, batch=2.
    n_vocab, n_embd, n_token, batch = 64, 32, 8, 2

    key = jax.random.PRNGKey(0)
    k_tok, k_emb, k_pos = jax.random.split(key, 3)

    # nn.Embedding default init ~ N(0, 1).
    token_embedding = jax.random.normal(k_emb, (n_vocab, n_embd), dtype=jnp.float32)
    # PyTorch module inits position_embedding to zeros; use random values here so
    # the fused add is actually exercised (deterministic via PRNGKey(0)).
    position_embedding = 0.02 * jax.random.normal(
        k_pos, (n_token, n_embd), dtype=jnp.float32)

    tokens = jax.random.randint(k_tok, (batch, n_token), 0, n_vocab, dtype=jnp.int32)

    out = clip_embedding(tokens, token_embedding, position_embedding)
    out = jax.block_until_ready(out)

    # Pure-JAX reference: embedding lookup + broadcast add.
    ref = token_embedding[tokens] + position_embedding[None, :, :]

    assert out.shape == (batch, n_token, n_embd)
    assert out.dtype == jnp.float32
    assert jnp.allclose(out, ref, atol=1e-5, rtol=1e-5)

    print("KERNEL_OK")
</pallas_src>

<mosaic_0001>
module attributes {stable_mosaic.version = 11 : i64} {
  func.func @_clip_embedding_kernel(%arg0: i32, %arg1: memref<16xi32, #tpu.memory_space<smem>>, %arg2: memref<64x32xf32, #tpu.memory_space<any>>, %arg3: memref<8x32xf32, #tpu.memory_space<vmem>>, %arg4: memref<1x8x32xf32, #tpu.memory_space<vmem>>, %arg5: memref<8x32xf32, #tpu.memory_space<vmem>>, %arg6: memref<!tpu.dma_semaphore, #tpu.memory_space<semaphore_mem>>) attributes {dimension_semantics = [#tpu.dimension_semantics<parallel>], iteration_bounds = array<i64: 2>, scalar_prefetch = 1 : i64, scratch_operands = 2 : i64, tpu.core_type = #tpu.core_type<tc>, window_params = [{}, {pipeline_mode = #tpu.pipeline_mode<synchronous>, transform_indices = @transform_1, window_bounds = array<i64: 8, 32>}, {transform_indices = @transform_2, window_bounds = array<i64: 1, 8, 32>}]} {
    %c8_i32 = arith.constant 8 : i32
    %0 = arith.muli %arg0, %c8_i32 : i32
    %c0_i32 = arith.constant 0 : i32
    %c8_i32_0 = arith.constant 8 : i32
    %1 = arith.addi %c0_i32, %c8_i32_0 : i32
    %c1_i32 = arith.constant 1 : i32
    scf.for %arg7 = %c0_i32 to %1 step %c1_i32  : i32 {
      %c1_i32_12 = arith.constant 1 : i32
      %9 = arith.muli %arg7, %c1_i32_12 : i32
      %c0_i32_13 = arith.constant 0 : i32
      %10 = arith.addi %c0_i32_13, %9 : i32
      %11 = arith.addi %0, %10 : i32
      %12 = arith.index_cast %11 : i32 to index
      %13 = memref.load %arg1[%12] : memref<16xi32, #tpu.memory_space<smem>>
      %c0_i32_14 = arith.constant 0 : i32
      %14 = tpu.memref_slice %arg2[%13, %c0_i32_14] : memref<64x32xf32, #tpu.memory_space<any>> -> memref<1x32xf32, #tpu.memory_space<any>>
      %c0_i32_15 = arith.constant 0 : i32
      %15 = tpu.memref_slice %arg5[%10, %c0_i32_15] : memref<8x32xf32, #tpu.memory_space<vmem>> -> memref<1x32xf32, #tpu.memory_space<vmem>>
      tpu.enqueue_dma source(%14 : memref<1x32xf32, #tpu.memory_space<any>>) target(%15 : memref<1x32xf32, #tpu.memory_space<vmem>>) target_semaphore(%arg6 : memref<!tpu.dma_semaphore, #tpu.memory_space<semaphore_mem>>)
    }
    %c8_i32_1 = arith.constant 8 : i32
    %c0_i32_2 = arith.constant 0 : i32
    %c8_i32_3 = arith.constant 8 : i32
    %2 = arith.addi %c0_i32_2, %c8_i32_3 : i32
    %c1_i32_4 = arith.constant 1 : i32
    scf.for %arg7 = %c0_i32_2 to %2 step %c1_i32_4  : i32 {
      %c1_i32_12 = arith.constant 1 : i32
      %9 = arith.muli %arg7, %c1_i32_12 : i32
      %c0_i32_13 = arith.constant 0 : i32
      %10 = arith.addi %c0_i32_13, %9 : i32
      %c0_i32_14 = arith.constant 0 : i32
      %c0_i32_15 = arith.constant 0 : i32
      %11 = tpu.memref_slice %arg2[%c0_i32_14, %c0_i32_15] : memref<64x32xf32, #tpu.memory_space<any>> -> memref<1x32xf32, #tpu.memory_space<any>>
      %c0_i32_16 = arith.constant 0 : i32
      %12 = tpu.memref_slice %arg5[%10, %c0_i32_16] : memref<8x32xf32, #tpu.memory_space<vmem>> -> memref<1x32xf32, #tpu.memory_space<vmem>>
      tpu.wait_dma2 semaphore(%arg6 : memref<!tpu.dma_semaphore, #tpu.memory_space<semaphore_mem>>) src(%11 : memref<1x32xf32, #tpu.memory_space<any>>) dst(%12 : memref<1x32xf32, #tpu.memory_space<vmem>>)
    }
    %c8_i32_5 = arith.constant 8 : i32
    %c0 = arith.constant 0 : index
    %c0_6 = arith.constant 0 : index
    %3 = vector.load %arg5[%c0, %c0_6] : memref<8x32xf32, #tpu.memory_space<vmem>>, vector<8x32xf32>
    %4 = vector.shape_cast %3 : vector<8x32xf32> to vector<1x8x32xf32>
    %c0_7 = arith.constant 0 : index
    %c0_8 = arith.constant 0 : index
    %5 = vector.load %arg3[%c0_7, %c0_8] : memref<8x32xf32, #tpu.memory_space<vmem>>, vector<8x32xf32>
    %6 = vector.shape_cast %5 : vector<8x32xf32> to vector<1x8x32xf32>
    %7 = arith.addf %4, %6 : vector<1x8x32xf32>
    %c0_9 = arith.constant 0 : index
    %c0_10 = arith.constant 0 : index
    %c0_11 = arith.constant 0 : index
    %8 = vector.load %arg4[%c0_9, %c0_10, %c0_11] : memref<1x8x32xf32, #tpu.memory_space<vmem>>, vector<1x8x32xf32>
    tpu.vector_store %arg4[%c0_9, %c0_10, %c0_11], %7 {strides = array<i32>} : memref<1x8x32xf32, #tpu.memory_space<vmem>>, vector<1x8x32xf32>,
    return
  }
  func.func @transform_1(%arg0: i32, %arg1: memref<16xi32, #tpu.memory_space<smem>>) -> (i32, i32) {
    %c0_i32 = arith.constant 0 : i32
    %c0_i32_0 = arith.constant 0 : i32
    %c0_i32_1 = arith.constant 0 : i32
    return %c0_i32, %c0_i32_0 : i32, i32
  }
  func.func @transform_2(%arg0: i32, %arg1: memref<16xi32, #tpu.memory_space<smem>>) -> (i32, i32, i32) {
    %c0_i32 = arith.constant 0 : i32
    %c0_i32_0 = arith.constant 0 : i32
    %c0_i32_1 = arith.constant 0 : i32
    return %arg0, %c0_i32, %c0_i32_0 : i32, i32, i32
  }
}

</mosaic_0001>

<bundles_post_ra>
// kernel: tpu_custom_call.1
= control target key start
LH: loop header
LB: loop body
LE: loop exit
PB: predicated region body
PF: predicated region fallthrough
CT: control target
= control target key end

     0   :  { %s561_s0 = inlined_call_operand.vmem [shape: s32[16], index: 0, kind: input, shape index: {}]   ;;  %s562_s1 = inlined_call_operand.vmem [shape: f32[64,32], index: 1, kind: input, shape index: {}]   ;;  %s563_s2 = inlined_call_operand.vmem [shape: f32[8,32], index: 2, kind: input, shape index: {}]   ;;  %s564_s3 = inlined_call_operand.hbm [shape: f32[2,8,32], index: 3, kind: output, shape index: {}]  }
   0x1   :  { %s8_s14 = sshll.u32 %s561_s0, 4  ;;  %s9_s14 = int_to_ptr.vmem [resolvable:$true] %s8_s14 }
   0x2   :  { %s327_s15 = scalar_lea.vmem %s9_s14, 16  ;;  %p332_p1 = scmp.lt.s32.totalorder %s9_s14, %s9_s14 }
   0x3   :  { %p328_p0 = scmp.ne.s32.totalorder %s9_s14, %s327_s15  ;;  %p333_p2 = scmp.lt.s32.totalorder %s327_s15, %s327_s15 }
   0x5   :  { %p334_p3 = por %p333_p2, %p332_p1 }
   0x7   :  { %p335_p4 = pnand %p334_p3, %p328_p0 }
   0x9   :  { %338 = shalt.err (!%p335_p4)  }
   0xa   :  { %s423_s16 = smov [#allocation5]  }
   0xb   :  { %11 = dma.vmem_to_smem %s9_s14, 16, %s423_s16, [#allocation4] }
   0xc   :  { %391 = dma.done.wait [#allocation4], 16 }
   0xd   :  { %392 = vsyncadd [#allocation4], 4294967280 }
   0xe   :  { %13 = sfence }
   0xf   :  { %14 = vsyncpa [#allocation7], 0 }
  0x10   :  { %16 = vsyncpa [#allocation7 + $0x1], 0  ;;  %s448_s17 = smov 0   ;;  %s450_s18 = smov 0  }
  0x11   :  { %s452_s0 = smov 0   ;;  %s454_s19 = smov 0  }
  0x12 LB: > { %s469_s20 = sadd.s32 4294967295, %s413_s19   ;;  %s261_s21 = sadd.s32 4294967294, %s413_s19   ;;  %s413_s19 = sphi %s454_s19, %s570_s19   ;;  %s409_s0 = sphi %s452_s0, %s569_s0   ;;  %s405_s18 = sphi %s450_s18, %s568_s18   ;;  %s401_s17 = sphi %s448_s17, %s567_s17  }
  0x13   : > { %s473_s22 = sadd.s32 1, %s413_s19   ;;  %s50_s23 = sadd.s32 1, %s409_s0 }
  0x14   : > { %s47_s24 = ssub.s32 %s413_s19, %s473_s22  ;;  %p60_p5 = scmp.ne.s32.totalorder %s409_s0, %s405_s18 }
  0x15   : > { %p48_p6 = scmp.eq.s32.totalorder %s47_s24, 0  ;;  %p61_p7 = scmp.eq.s32.totalorder %s469_s20, 1 }
  0x16   : > { %p66_p8 = scmp.ne.s32.totalorder %s405_s18, %s401_s17  ;;  %p67_p9 = scmp.eq.s32.totalorder %s261_s21, 1 }
  0x17   : > { %s484_s25 = scalar_select %p48_p6, %s409_s0, %s50_s23  }
  0x18   : > { %p486_p10 = por %p61_p7, %p60_p5  ;;  %p490_p11 = por %p67_p9, %p66_p8 }
  0x19   : > { %p263_p12 = scmp.ge.s32.totalorder %s413_s19, 1  ;;  %p88_p13 = scmp.lt.s32.totalorder %s413_s19, 3 }
  0x1b   : > { %p89_p0 = pnand %p263_p12, %p88_p13 }
  0x1c   : > { %s100_s28 = sand.u32 (!%p89_p0), 1, %s405_s18   ;;  %s265_s29 = sshll.u32 (!%p89_p0), %s469_s20, 3 }
  0x1d   : > { %92 = sbr.rel (%p89_p0) target bundleno = 84 (0x54), region = 24  ;;  %s500_s30 = sshll.u32 (!%p89_p0), %s100_s28, 3 }
  0x1e   : > { %s102_s4 = scalar_lea.vmem (!%p89_p0), [#allocation6], %s500_s30  ;;  %s415_s5 = smov (!%p89_p0), 0  }
  0x24 LB: >> { %s110_s6 = sadd.s32 %s417_s5, %s265_s29  ;;  %s113_s11 = scalar_lea.vmem [#allocation2], %s417_s5  ;;  %s417_s5 = sphi %s415_s5, %s109_s5  }
  0x25   : >> { %s111_s7 = sld [smem:[#allocation5 + %s110_s6]] }
  0x2b   : >> { %s112_s10 = scalar_lea.vmem %s562_s1, %s111_s7 }
  0x2c   : >> { %v131_v0 = vld [vmem:[%s112_s10] sm:$0x1] }
  0x2d   : >> { %132 = vst [vmem:[%s113_s11] sm:$0x1] %v131_v0 }
  0x2e   : >> { %157 = vsyncadd [#allocation3], 16  ;;  %s109_s5 = sadd.s32 1, %s417_s5  }
  0x2f   : >> { %p106_p1 = scmp.ge.s32.totalorder %s109_s5, 8  }
  0x30   : > { %s419_s12 = smov (%p106_p1), 0  }
  0x31   : > { %108 = sbr.rel (!%p106_p1) target bundleno = 36 (0x24), region = 112 }
  0x38 LB: >> { %393 = dma.done.wait [#allocation3], 16  ;;  %s421_s12 = sphi %s419_s12, %s163_s12  }
  0x39   : >> { %394 = vsyncadd [#allocation3], 4294967280  ;;  %s163_s12 = sadd.s32 1, %s421_s12  }
  0x3a   : >> { %p160_p2 = scmp.ge.s32.totalorder %s163_s12, 8  }
  0x3b   : > { %v167_v1 = vld [vmem:[#allocation2] sm:$0xff] (%p160_p2)  ;;  %vm170_vm0 = vcmask (%p160_p2), 261120   ;;  %s267_s15 = sshll.u32 (%p160_p2), %s469_s20, 7  ;;  %s186_s24 = sshll.u32 (%p160_p2), %s102_s4, 4  ;;  %s517_s24 = int_to_ptr.vmem [resolvable:$true] %s186_s24 }
  0x3c   : > { %162 = sbr.rel (!%p160_p2) target bundleno = 56 (0x38), region = 123  ;;  %v168_v2 = vld [vmem:[%s563_s2] sm:$0xff] (%p160_p2)  ;;  %s513_s23 = scalar_lea.hbm (%p160_p2), %s564_s3, %s267_s15 }
  0x3d   : > { %v169_v3 = vadd.f32 (%p160_p2), %v168_v2, %v167_v1  ;;  %s173_s29 = scalar_lea.sflag (%p160_p2), [#allocation7], %s100_s28  ;;  %s339_s5 = scalar_lea.vmem (%p160_p2), %s517_s24, 128 }
  0x3e   : > { %p340_p3 = scmp.ne.s32.totalorder (%p160_p2), %s517_s24, %s339_s5  ;;  %s424_s20 = smov (%p160_p2), [#allocation6]  }
  0x3f   : > { %171 = vst.msk [vmem:[%s102_s4] sm:$0xff] (%p160_p2), %vm170_vm0, %v169_v3  ;;  %s343_s6 = sshll.u32 (%p160_p2), %s424_s20, 4  ;;  %s344_s6 = int_to_ptr.vmem [resolvable:$false] %s343_s6 }
  0x40   : > { %p341_p4 = pnand (%p160_p2), %p340_p3, %p486_p10  ;;  %s345_s7 = scalar_lea.vmem (%p160_p2), %s344_s6, 256 }
  0x41   : > { %p346_p6 = scmp.lt.s32.totalorder (%p160_p2), %s517_s24, %s344_s6  ;;  %p347_p7 = scmp.lt.s32.totalorder (%p160_p2), %s345_s7, %s339_s5 }
  0x42   : > { %p342_p5 = pneg (%p160_p2), %p341_p4 }
  0x43   : > { %p348_p8 = por %p347_p7, %p346_p6 }
  0x45   : > { %p349_p9 = pnand %p348_p8, %p342_p5 }
  0x47   : > { %352 = shalt.err (!%p349_p9)
}
  0x48   : > { %s353_s28 = scalar_lea.hbm %s513_s23, 128  ;;  %s357_s8 = scalar_lea.hbm %s564_s3, 256 }
  0x49   : > { %p354_p12 = scmp.ne.s32.totalorder %s513_s23, %s353_s28  ;;  %p358_p1 = scmp.lt.u32.totalorder %s513_s23, %s564_s3 }
  0x4a   : > { %p359_p2 = scmp.lt.u32.totalorder %s357_s8, %s353_s28  ;;  %p361_p4 = scmp.lt.u32.totalorder %s353_s28, %s513_s23 }
  0x4b   : > { %p355_p13 = pnand %p354_p12, %p486_p10 }
  0x4c   : > { %p360_p3 = por %p359_p2, %p358_p1 }
  0x4d   : > { %p356_p0 = pneg %p355_p13 }
  0x4e   : > { %p362_p5 = por %p361_p4, %p360_p3 }
  0x50   : > { %p363_p6 = pnand %p362_p5, %p356_p0 }
  0x52   : > { %366 = shalt.err (!%p363_p6)
}
  0x53   : > { %271 = dma.vmem_to_hbm [thread:$0]  (%p486_p10), %s517_s24, 128, %s513_s23, %s173_s29  }
  0x54 PF: > { %p277_p7 = scmp.ge.s32.totalorder %s413_s19, 2  ;;  %s198_s11 = sand.u32 1, %s401_s17  }
  0x55   : > { %s199_s12 = scalar_lea.sflag [#allocation7], %s198_s11 }
  0x56   : > { %p274_p8 = pnand %p277_p7, %p490_p11 }
  0x58   : > { %396 = dma.done.wait (!%p274_p8), %s199_s12, 128  }
  0x59   : > { %398 = vsyncadd (!%p274_p8), %s199_s12, 4294967168  ;;  %p19_p9 = scmp.ge.s32.totalorder %s473_s22, 4   ;;  %s567_s17 = smov %s405_s18 }
  0x5a   : > { %s568_s18 = smov %s409_s0  ;;  %s569_s0 = smov %s484_s25 }
  0x5b   : > { %s570_s19 = smov %s473_s22  ;;  %21 = sbr.rel (!%p19_p9) target bundleno = 18 (0x12), region = 134 }
  0x62   :  { %204 = vsyncpa [#allocation7], 1 }
  0x63   :  { %206 = vsyncpa [#allocation7 + $0x1], 1 }
  0x64   :  { %207 = vsyncmov [#allocation3] }
  0x67   :  { %s208_s19 = vpop.sfrf %207 }
  0x68   :  { %p270_p10 = scmp.ne.s32.totalorder %s208_s19, 0 }
  0x6a   :  { %212 = shalt.err (%p270_p10)  }

</bundles_post_ra>
